<compile_context>
chip_gen: v7x
topology: tpu7x:2x2x1
jax: 0.10.0
libtpu: 0.0.40
codegen_flags: <defaults>
</compile_context>

<pallas_src>
import jax
import jax.numpy as jnp
from jax import lax
from jax.experimental import pallas as pl
from jax.experimental.pallas import tpu as pltpu


def relation_kernel(w2_ref, b2_ref, class_ref, query_ref, m_ref, out_ref, cm_ref):
    # w2_ref: (O,) f32 SMEM, b2_ref: (1,) f32 SMEM
    # class_ref: (C, 2H) VMEM, query_ref: (Q, 2H) VMEM
    # m_ref: (2H, O*2H) VMEM  with m_ref[b, i*2H + a] = M[b, a, i]
    # out_ref: (Q, C) VMEM
    # cm_ref: (C, O*2H) f32 VMEM scratch
    C, H2 = class_ref.shape
    Q = query_ref.shape[0]
    O = w2_ref.shape[0]

    # One lane-dense MXU matmul: (C, 2H) x (2H, O*2H) -> (C, O*2H).
    # cm[c, i*2H + a] = sum_b class[c, b] * M[b, a, i]
    cm_ref[...] = jnp.dot(class_ref[...], m_ref[...],
                          preferred_element_type=jnp.float32)

    q = query_ref[...]                                   # (Q, 2H)
    acc = jnp.zeros((Q, C), jnp.float32)
    # Statically unrolled over output_size (O is small and compile-time known).
    for i in range(O):
        cv_i = cm_ref[:, i * H2:(i + 1) * H2]            # (C, 2H) = class @ M[:, :, i]
        # s_i[q, c] = sum_a query[q, a] * cv_i[c, a]  (contract last dims, no transpose)
        s_i = lax.dot_general(
            q, cv_i,
            dimension_numbers=(((1,), (1,)), ((), ())),
            preferred_element_type=jnp.float32,
        )                                                # (Q, C)
        acc = acc + jnp.maximum(s_i, 0.0) * w2_ref[i]

    out_ref[...] = jax.nn.sigmoid(acc + b2_ref[0])


def prepare_relation_weights(M):
    """Setup-time (once per model, NOT per forward call) layout transform of M.

    M: (2H, 2H, O) as in the PyTorch module, M[b, a, i].
    Returns M_flat: (2H, O*2H) with M_flat[b, i*2H + a] = M[b, a, i].
    """
    H2, _, O = M.shape
    return jnp.transpose(M, (0, 2, 1)).reshape(H2, O * H2)


def relation_forward(class_vector, query_vector, M_flat, w2, b2):
    C, H2 = class_vector.shape
    Q, _ = query_vector.shape
    O = w2.shape[0]

    return pl.pallas_call(
        relation_kernel,
        out_shape=jax.ShapeDtypeStruct((Q, C), jnp.float32),
        in_specs=[
            pl.BlockSpec(memory_space=pltpu.MemorySpace.SMEM),   # w2 (O,)
            pl.BlockSpec(memory_space=pltpu.MemorySpace.SMEM),   # b2 (1,)
            pl.BlockSpec(memory_space=pltpu.MemorySpace.VMEM),   # class_vector (C, 2H)
            pl.BlockSpec(memory_space=pltpu.MemorySpace.VMEM),   # query_vector (Q, 2H)
            pl.BlockSpec(memory_space=pltpu.MemorySpace.VMEM),   # M_flat (2H, O*2H)
        ],
        out_specs=pl.BlockSpec(memory_space=pltpu.MemorySpace.VMEM),
        scratch_shapes=[pltpu.VMEM((C, O * H2), jnp.float32)],
    )(w2, b2, class_vector, query_vector, M_flat)


def relation_ref(class_vector, query_vector, M, w2, b2):
    # Pure-JAX reference matching the PyTorch loop (uses the original M layout).
    cv = jnp.einsum("cb,bai->cai", class_vector, M)      # class @ M[:, :, i]
    s = jnp.einsum("qa,cai->iqc", query_vector, cv)      # query @ (.)^T
    act = jnp.maximum(s, 0.0)
    other = jnp.einsum("iqc,i->qc", act, w2) + b2[0]
    return jax.nn.sigmoid(other)


if __name__ == "__main__":
    key = jax.random.PRNGKey(0)

    hidden_size = 16
    H2 = hidden_size * 2          # forward operates on hidden_size * 2 features
    class_num = 5
    output_size = 16
    query_size = 8

    k1, k2, k3, k4, k5 = jax.random.split(key, 5)

    # xavier_normal_ on (2H, 2H, O): fan_in = fan_out = 2H * O
    fan = H2 * output_size
    xav_std = (2.0 / (fan + fan)) ** 0.5
    M = jax.random.normal(k1, (H2, H2, output_size), jnp.float32) * xav_std

    # l2 = Linear(output_size, 1): weight (1, O) -> flattened to (O,), bias (1,)
    w2 = jax.random.normal(k2, (output_size,), jnp.float32) * (1.0 / output_size ** 0.5)
    b2 = jax.random.normal(k3, (1,), jnp.float32) * 0.1

    class_vector = jax.random.normal(k4, (class_num, H2), jnp.float32)
    query_vector = jax.random.normal(k5, (query_size, H2), jnp.float32)

    # Weight layout prepared ONCE (hoisted out of the per-call path).
    M_flat = jax.block_until_ready(prepare_relation_weights(M))

    out = relation_forward(class_vector, query_vector, M_flat, w2, b2)
    out = jax.block_until_ready(out)

    ref = relation_ref(class_vector, query_vector, M, w2, b2)
    assert out.shape == (query_size, class_num), out.shape
    assert jnp.allclose(out, ref, atol=1e-5, rtol=1e-5), jnp.max(jnp.abs(out - ref))

    print("KERNEL_OK")
</pallas_src>

<mosaic_0001>
module attributes {stable_mosaic.version = 11 : i64} {
  func.func @relation_kernel(%arg0: memref<16xf32, #tpu.memory_space<smem>>, %arg1: memref<1xf32, #tpu.memory_space<smem>>, %arg2: memref<5x32xf32, #tpu.memory_space<vmem>>, %arg3: memref<8x32xf32, #tpu.memory_space<vmem>>, %arg4: memref<32x512xf32, #tpu.memory_space<vmem>>, %arg5: memref<8x5xf32, #tpu.memory_space<vmem>>, %arg6: memref<5x512xf32, #tpu.memory_space<vmem>>) attributes {dimension_semantics = [], scalar_prefetch = 0 : i64, scratch_operands = 1 : i64, tpu.core_type = #tpu.core_type<tc>} {
    %c0 = arith.constant 0 : index
    %c0_0 = arith.constant 0 : index
    %0 = vector.load %arg2[%c0, %c0_0] : memref<5x32xf32, #tpu.memory_space<vmem>>, vector<5x32xf32>
    %c0_1 = arith.constant 0 : index
    %c0_2 = arith.constant 0 : index
    %1 = vector.load %arg4[%c0_1, %c0_2] : memref<32x512xf32, #tpu.memory_space<vmem>>, vector<32x512xf32>
    %cst = arith.constant dense<0.000000e+00> : vector<5x512xf32>
    %2 = tpu.matmul %0, %1, %cst {dimension_numbers = #tpu.dot_dimension_numbers<[1], [0], [0], [1], [0, 0, 1, 1], [], []>} : vector<5x32xf32>, vector<32x512xf32>, vector<5x512xf32> -> vector<5x512xf32>
    %c0_3 = arith.constant 0 : index
    %c0_4 = arith.constant 0 : index
    %3 = vector.load %arg6[%c0_3, %c0_4] : memref<5x512xf32, #tpu.memory_space<vmem>>, vector<5x512xf32>
    tpu.vector_store %arg6[%c0_3, %c0_4], %2 {strides = array<i32>} : memref<5x512xf32, #tpu.memory_space<vmem>>, vector<5x512xf32>,
    %c0_5 = arith.constant 0 : index
    %c0_6 = arith.constant 0 : index
    %4 = vector.load %arg3[%c0_5, %c0_6] : memref<8x32xf32, #tpu.memory_space<vmem>>, vector<8x32xf32>
    %cst_7 = arith.constant 0.000000e+00 : f32
    %5 = vector.broadcast %cst_7 : f32 to vector<8x5xf32>
    %c0_8 = arith.constant 0 : index
    %c0_9 = arith.constant 0 : index
    %6 = vector.load %arg6[%c0_8, %c0_9] : memref<5x512xf32, #tpu.memory_space<vmem>>, vector<5x32xf32>
    %cst_10 = arith.constant dense<0.000000e+00> : vector<8x5xf32>
    %7 = tpu.matmul %4, %6, %cst_10 {dimension_numbers = #tpu.dot_dimension_numbers<[1], [1], [0], [0], [0, 0, 1, 0], [], []>} : vector<8x32xf32>, vector<5x32xf32>, vector<8x5xf32> -> vector<8x5xf32>
    %cst_11 = arith.constant 0.000000e+00 : f32
    %8 = vector.broadcast %cst_11 : f32 to vector<8x5xf32>
    %9 = arith.maximumf %7, %8 : vector<8x5xf32>
    %c0_12 = arith.constant 0 : index
    %10 = memref.load %arg0[%c0_12] : memref<16xf32, #tpu.memory_space<smem>>
    %11 = vector.broadcast %10 : f32 to vector<8x5xf32>
    %12 = arith.mulf %9, %11 : vector<8x5xf32>
    %13 = arith.addf %5, %12 : vector<8x5xf32>
    %c0_13 = arith.constant 0 : index
    %c32 = arith.constant 32 : index
    %14 = vector.load %arg6[%c0_13, %c32] : memref<5x512xf32, #tpu.memory_space<vmem>>, vector<5x32xf32>
    %cst_14 = arith.constant dense<0.000000e+00> : vector<8x5xf32>
    %15 = tpu.matmul %4, %14, %cst_14 {dimension_numbers = #tpu.dot_dimension_numbers<[1], [1], [0], [0], [0, 0, 1, 0], [], []>} : vector<8x32xf32>, vector<5x32xf32>, vector<8x5xf32> -> vector<8x5xf32>
    %cst_15 = arith.constant 0.000000e+00 : f32
    %16 = vector.broadcast %cst_15 : f32 to vector<8x5xf32>
    %17 = arith.maximumf %15, %16 : vector<8x5xf32>
    %c1 = arith.constant 1 : index
    %18 = memref.load %arg0[%c1] : memref<16xf32, #tpu.memory_space<smem>>
    %19 = vector.broadcast %18 : f32 to vector<8x5xf32>
    %20 = arith.mulf %17, %19 : vector<8x5xf32>
    %21 = arith.addf %13, %20 : vector<8x5xf32>
    %c0_16 = arith.constant 0 : index
    %c64 = arith.constant 64 : index
    %22 = vector.load %arg6[%c0_16, %c64] : memref<5x512xf32, #tpu.memory_space<vmem>>, vector<5x32xf32>
    %cst_17 = arith.constant dense<0.000000e+00> : vector<8x5xf32>
    %23 = tpu.matmul %4, %22, %cst_17 {dimension_numbers = #tpu.dot_dimension_numbers<[1], [1], [0], [0], [0, 0, 1, 0], [], []>} : vector<8x32xf32>, vector<5x32xf32>, vector<8x5xf32> -> vector<8x5xf32>
    %cst_18 = arith.constant 0.000000e+00 : f32
    %24 = vector.broadcast %cst_18 : f32 to vector<8x5xf32>
    %25 = arith.maximumf %23, %24 : vector<8x5xf32>
    %c2 = arith.constant 2 : index
    %26 = memref.load %arg0[%c2] : memref<16xf32, #tpu.memory_space<smem>>
    %27 = vector.broadcast %26 : f32 to vector<8x5xf32>
    %28 = arith.mulf %25, %27 : vector<8x5xf32>
    %29 = arith.addf %21, %28 : vector<8x5xf32>
    %c0_19 = arith.constant 0 : index
    %c96 = arith.constant 96 : index
    %30 = vector.load %arg6[%c0_19, %c96] : memref<5x512xf32, #tpu.memory_space<vmem>>, vector<5x32xf32>
    %cst_20 = arith.constant dense<0.000000e+00> : vector<8x5xf32>
    %31 = tpu.matmul %4, %30, %cst_20 {dimension_numbers = #tpu.dot_dimension_numbers<[1], [1], [0], [0], [0, 0, 1, 0], [], []>} : vector<8x32xf32>, vector<5x32xf32>, vector<8x5xf32> -> vector<8x5xf32>
    %cst_21 = arith.constant 0.000000e+00 : f32
    %32 = vector.broadcast %cst_21 : f32 to vector<8x5xf32>
    %33 = arith.maximumf %31, %32 : vector<8x5xf32>
    %c3 = arith.constant 3 : index
    %34 = memref.load %arg0[%c3] : memref<16xf32, #tpu.memory_space<smem>>
    %35 = vector.broadcast %34 : f32 to vector<8x5xf32>
    %36 = arith.mulf %33, %35 : vector<8x5xf32>
    %37 = arith.addf %29, %36 : vector<8x5xf32>
    %c0_22 = arith.constant 0 : index
    %c128 = arith.constant 128 : index
    %38 = vector.load %arg6[%c0_22, %c128] : memref<5x512xf32, #tpu.memory_space<vmem>>, vector<5x32xf32>
    %cst_23 = arith.constant dense<0.000000e+00> : vector<8x5xf32>
    %39 = tpu.matmul %4, %38, %cst_23 {dimension_numbers = #tpu.dot_dimension_numbers<[1], [1], [0], [0], [0, 0, 1, 0], [], []>} : vector<8x32xf32>, vector<5x32xf32>, vector<8x5xf32> -> vector<8x5xf32>
    %cst_24 = arith.constant 0.000000e+00 : f32
    %40 = vector.broadcast %cst_24 : f32 to vector<8x5xf32>
    %41 = arith.maximumf %39, %40 : vector<8x5xf32>
    %c4 = arith.constant 4 : index
    %42 = memref.load %arg0[%c4] : memref<16xf32, #tpu.memory_space<smem>>
    %43 = vector.broadcast %42 : f32 to vector<8x5xf32>
    %44 = arith.mulf %41, %43 : vector<8x5xf32>
    %45 = arith.addf %37, %44 : vector<8x5xf32>
    %c0_25 = arith.constant 0 : index
    %c160 = arith.constant 160 : index
    %46 = vector.load %arg6[%c0_25, %c160] : memref<5x512xf32, #tpu.memory_space<vmem>>, vector<5x32xf32>
    %cst_26 = arith.constant dense<0.000000e+00> : vector<8x5xf32>
    %47 = tpu.matmul %4, %46, %cst_26 {dimension_numbers = #tpu.dot_dimension_numbers<[1], [1], [0], [0], [0, 0, 1, 0], [], []>} : vector<8x32xf32>, vector<5x32xf32>, vector<8x5xf32> -> vector<8x5xf32>
    %cst_27 = arith.constant 0.000000e+00 : f32
    %48 = vector.broadcast %cst_27 : f32 to vector<8x5xf32>
    %49 = arith.maximumf %47, %48 : vector<8x5xf32>
    %c5 = arith.constant 5 : index
    %50 = memref.load %arg0[%c5] : memref<16xf32, #tpu.memory_space<smem>>
    %51 = vector.broadcast %50 : f32 to vector<8x5xf32>
    %52 = arith.mulf %49, %51 : vector<8x5xf32>
    %53 = arith.addf %45, %52 : vector<8x5xf32>
    %c0_28 = arith.constant 0 : index
    %c192 = arith.constant 192 : index
    %54 = vector.load %arg6[%c0_28, %c192] : memref<5x512xf32, #tpu.memory_space<vmem>>, vector<5x32xf32>
    %cst_29 = arith.constant dense<0.000000e+00> : vector<8x5xf32>
    %55 = tpu.matmul %4, %54, %cst_29 {dimension_numbers = #tpu.dot_dimension_numbers<[1], [1], [0], [0], [0, 0, 1, 0], [], []>} : vector<8x32xf32>, vector<5x32xf32>, vector<8x5xf32> -> vector<8x5xf32>
    %cst_30 = arith.constant 0.000000e+00 : f32
    %56 = vector.broadcast %cst_30 : f32 to vector<8x5xf32>
    %57 = arith.maximumf %55, %56 : vector<8x5xf32>
    %c6 = arith.constant 6 : index
    %58 = memref.load %arg0[%c6] : memref<16xf32, #tpu.memory_space<smem>>
    %59 = vector.broadcast %58 : f32 to vector<8x5xf32>
    %60 = arith.mulf %57, %59 : vector<8x5xf32>
    %61 = arith.addf %53, %60 : vector<8x5xf32>
    %c0_31 = arith.constant 0 : index
    %c224 = arith.constant 224 : index
    %62 = vector.load %arg6[%c0_31, %c224] : memref<5x512xf32, #tpu.memory_space<vmem>>, vector<5x32xf32>
    %cst_32 = arith.constant dense<0.000000e+00> : vector<8x5xf32>
    %63 = tpu.matmul %4, %62, %cst_32 {dimension_numbers = #tpu.dot_dimension_numbers<[1], [1], [0], [0], [0, 0, 1, 0], [], []>} : vector<8x32xf32>, vector<5x32xf32>, vector<8x5xf32> -> vector<8x5xf32>
    %cst_33 = arith.constant 0.000000e+00 : f32
    %64 = vector.broadcast %cst_33 : f32 to vector<8x5xf32>
    %65 = arith.maximumf %63, %64 : vector<8x5xf32>
    %c7 = arith.constant 7 : index
    %66 = memref.load %arg0[%c7] : memref<16xf32, #tpu.memory_space<smem>>
    %67 = vector.broadcast %66 : f32 to vector<8x5xf32>
    %68 = arith.mulf %65, %67 : vector<8x5xf32>
    %69 = arith.addf %61, %68 : vector<8x5xf32>
    %c0_34 = arith.constant 0 : index
    %c256 = arith.constant 256 : index
    %70 = vector.load %arg6[%c0_34, %c256] : memref<5x512xf32, #tpu.memory_space<vmem>>, vector<5x32xf32>
    %cst_35 = arith.constant dense<0.000000e+00> : vector<8x5xf32>
    %71 = tpu.matmul %4, %70, %cst_35 {dimension_numbers = #tpu.dot_dimension_numbers<[1], [1], [0], [0], [0, 0, 1, 0], [], []>} : vector<8x32xf32>, vector<5x32xf32>, vector<8x5xf32> -> vector<8x5xf32>
    %cst_36 = arith.constant 0.000000e+00 : f32
    %72 = vector.broadcast %cst_36 : f32 to vector<8x5xf32>
    %73 = arith.maximumf %71, %72 : vector<8x5xf32>
    %c8 = arith.constant 8 : index
    %74 = memref.load %arg0[%c8] : memref<16xf32, #tpu.memory_space<smem>>
    %75 = vector.broadcast %74 : f32 to vector<8x5xf32>
    %76 = arith.mulf %73, %75 : vector<8x5xf32>
    %77 = arith.addf %69, %76 : vector<8x5xf32>
    %c0_37 = arith.constant 0 : index
    %c288 = arith.constant 288 : index
    %78 = vector.load %arg6[%c0_37, %c288] : memref<5x512xf32, #tpu.memory_space<vmem>>, vector<5x32xf32>
    %cst_38 = arith.constant dense<0.000000e+00> : vector<8x5xf32>
    %79 = tpu.matmul %4, %78, %cst_38 {dimension_numbers = #tpu.dot_dimension_numbers<[1], [1], [0], [0], [0, 0, 1, 0], [], []>} : vector<8x32xf32>, vector<5x32xf32>, vector<8x5xf32> -> vector<8x5xf32>
    %cst_39 = arith.constant 0.000000e+00 : f32
    %80 = vector.broadcast %cst_39 : f32 to vector<8x5xf32>
    %81 = arith.maximumf %79, %80 : vector<8x5xf32>
    %c9 = arith.constant 9 : index
    %82 = memref.load %arg0[%c9] : memref<16xf32, #tpu.memory_space<smem>>
    %83 = vector.broadcast %82 : f32 to vector<8x5xf32>
    %84 = arith.mulf %81, %83 : vector<8x5xf32>
    %85 = arith.addf %77, %84 : vector<8x5xf32>
    %c0_40 = arith.constant 0 : index
    %c320 = arith.constant 320 : index
    %86 = vector.load %arg6[%c0_40, %c320] : memref<5x512xf32, #tpu.memory_space<vmem>>, vector<5x32xf32>
    %cst_41 = arith.constant dense<0.000000e+00> : vector<8x5xf32>
    %87 = tpu.matmul %4, %86, %cst_41 {dimension_numbers = #tpu.dot_dimension_numbers<[1], [1], [0], [0], [0, 0, 1, 0], [], []>} : vector<8x32xf32>, vector<5x32xf32>, vector<8x5xf32> -> vector<8x5xf32>
    %cst_42 = arith.constant 0.000000e+00 : f32
    %88 = vector.broadcast %cst_42 : f32 to vector<8x5xf32>
    %89 = arith.maximumf %87, %88 : vector<8x5xf32>
    %c10 = arith.constant 10 : index
    %90 = memref.load %arg0[%c10] : memref<16xf32, #tpu.memory_space<smem>>
    %91 = vector.broadcast %90 : f32 to vector<8x5xf32>
    %92 = arith.mulf %89, %91 : vector<8x5xf32>
    %93 = arith.addf %85, %92 : vector<8x5xf32>
    %c0_43 = arith.constant 0 : index
    %c352 = arith.constant 352 : index
    %94 = vector.load %arg6[%c0_43, %c352] : memref<5x512xf32, #tpu.memory_space<vmem>>, vector<5x32xf32>
    %cst_44 = arith.constant dense<0.000000e+00> : vector<8x5xf32>
    %95 = tpu.matmul %4, %94, %cst_44 {dimension_numbers = #tpu.dot_dimension_numbers<[1], [1], [0], [0], [0, 0, 1, 0], [], []>} : vector<8x32xf32>, vector<5x32xf32>, vector<8x5xf32> -> vector<8x5xf32>
    %cst_45 = arith.constant 0.000000e+00 : f32
    %96 = vector.broadcast %cst_45 : f32 to vector<8x5xf32>
    %97 = arith.maximumf %95, %96 : vector<8x5xf32>
    %c11 = arith.constant 11 : index
    %98 = memref.load %arg0[%c11] : memref<16xf32, #tpu.memory_space<smem>>
    %99 = vector.broadcast %98 : f32 to vector<8x5xf32>
    %100 = arith.mulf %97, %99 : vector<8x5xf32>
    %101 = arith.addf %93, %100 : vector<8x5xf32>
    %c0_46 = arith.constant 0 : index
    %c384 = arith.constant 384 : index
    %102 = vector.load %arg6[%c0_46, %c384] : memref<5x512xf32, #tpu.memory_space<vmem>>, vector<5x32xf32>
    %cst_47 = arith.constant dense<0.000000e+00> : vector<8x5xf32>
    %103 = tpu.matmul %4, %102, %cst_47 {dimension_numbers = #tpu.dot_dimension_numbers<[1], [1], [0], [0], [0, 0, 1, 0], [], []>} : vector<8x32xf32>, vector<5x32xf32>, vector<8x5xf32> -> vector<8x5xf32>
    %cst_48 = arith.constant 0.000000e+00 : f32
    %104 = vector.broadcast %cst_48 : f32 to vector<8x5xf32>
    %105 = arith.maximumf %103, %104 : vector<8x5xf32>
    %c12 = arith.constant 12 : index
    %106 = memref.load %arg0[%c12] : memref<16xf32, #tpu.memory_space<smem>>
    %107 = vector.broadcast %106 : f32 to vector<8x5xf32>
    %108 = arith.mulf %105, %107 : vector<8x5xf32>
    %109 = arith.addf %101, %108 : vector<8x5xf32>
    %c0_49 = arith.constant 0 : index
    %c416 = arith.constant 416 : index
    %110 = vector.load %arg6[%c0_49, %c416] : memref<5x512xf32, #tpu.memory_space<vmem>>, vector<5x32xf32>
    %cst_50 = arith.constant dense<0.000000e+00> : vector<8x5xf32>
    %111 = tpu.matmul %4, %110, %cst_50 {dimension_numbers = #tpu.dot_dimension_numbers<[1], [1], [0], [0], [0, 0, 1, 0], [], []>} : vector<8x32xf32>, vector<5x32xf32>, vector<8x5xf32> -> vector<8x5xf32>
    %cst_51 = arith.constant 0.000000e+00 : f32
    %112 = vector.broadcast %cst_51 : f32 to vector<8x5xf32>
    %113 = arith.maximumf %111, %112 : vector<8x5xf32>
    %c13 = arith.constant 13 : index
    %114 = memref.load %arg0[%c13] : memref<16xf32, #tpu.memory_space<smem>>
    %115 = vector.broadcast %114 : f32 to vector<8x5xf32>
    %116 = arith.mulf %113, %115 : vector<8x5xf32>
    %117 = arith.addf %109, %116 : vector<8x5xf32>
    %c0_52 = arith.constant 0 : index
    %c448 = arith.constant 448 : index
    %118 = vector.load %arg6[%c0_52, %c448] : memref<5x512xf32, #tpu.memory_space<vmem>>, vector<5x32xf32>
    %cst_53 = arith.constant dense<0.000000e+00> : vector<8x5xf32>
    %119 = tpu.matmul %4, %118, %cst_53 {dimension_numbers = #tpu.dot_dimension_numbers<[1], [1], [0], [0], [0, 0, 1, 0], [], []>} : vector<8x32xf32>, vector<5x32xf32>, vector<8x5xf32> -> vector<8x5xf32>
    %cst_54 = arith.constant 0.000000e+00 : f32
    %120 = vector.broadcast %cst_54 : f32 to vector<8x5xf32>
    %121 = arith.maximumf %119, %120 : vector<8x5xf32>
    %c14 = arith.constant 14 : index
    %122 = memref.load %arg0[%c14] : memref<16xf32, #tpu.memory_space<smem>>
    %123 = vector.broadcast %122 : f32 to vector<8x5xf32>
    %124 = arith.mulf %121, %123 : vector<8x5xf32>
    %125 = arith.addf %117, %124 : vector<8x5xf32>
    %c0_55 = arith.constant 0 : index
    %c480 = arith.constant 480 : index
    %126 = vector.load %arg6[%c0_55, %c480] : memref<5x512xf32, #tpu.memory_space<vmem>>, vector<5x32xf32>
    %cst_56 = arith.constant dense<0.000000e+00> : vector<8x5xf32>
    %127 = tpu.matmul %4, %126, %cst_56 {dimension_numbers = #tpu.dot_dimension_numbers<[1], [1], [0], [0], [0, 0, 1, 0], [], []>} : vector<8x32xf32>, vector<5x32xf32>, vector<8x5xf32> -> vector<8x5xf32>
    %cst_57 = arith.constant 0.000000e+00 : f32
    %128 = vector.broadcast %cst_57 : f32 to vector<8x5xf32>
    %129 = arith.maximumf %127, %128 : vector<8x5xf32>
    %c15 = arith.constant 15 : index
    %130 = memref.load %arg0[%c15] : memref<16xf32, #tpu.memory_space<smem>>
    %131 = vector.broadcast %130 : f32 to vector<8x5xf32>
    %132 = arith.mulf %129, %131 : vector<8x5xf32>
    %133 = arith.addf %125, %132 : vector<8x5xf32>
    %c0_58 = arith.constant 0 : index
    %134 = memref.load %arg1[%c0_58] : memref<1xf32, #tpu.memory_space<smem>>
    %135 = vector.broadcast %134 : f32 to vector<8x5xf32>
    %136 = arith.addf %133, %135 : vector<8x5xf32>
    %137 = arith.negf %136 : vector<8x5xf32>
    %138 = math.exp %137 : vector<8x5xf32>
    %cst_59 = arith.constant 1.000000e+00 : f32
    %139 = vector.broadcast %cst_59 : f32 to vector<8x5xf32>
    %140 = arith.addf %139, %138 : vector<8x5xf32>
    %141 = arith.divf %139, %140 : vector<8x5xf32>
    %c0_60 = arith.constant 0 : index
    %c0_61 = arith.constant 0 : index
    %142 = vector.load %arg5[%c0_60, %c0_61] : memref<8x5xf32, #tpu.memory_space<vmem>>, vector<8x5xf32>
    tpu.vector_store %arg5[%c0_60, %c0_61], %141 {strides = array<i32>} : memref<8x5xf32, #tpu.memory_space<vmem>>, vector<8x5xf32>,
    return
  }
}

</mosaic_0001>

<bundles_post_ra>
// kernel: tpu_custom_call.1
= control target key start
LH: loop header
LB: loop body
LE: loop exit
PB: predicated region body
PF: predicated region fallthrough
CT: control target
= control target key end

     0   :  { %11 = vsyncpa [#allocation7], 0  ;;  %s2030_s0 = inlined_call_operand.vmem [shape: f32[16], index: 0, kind: input, shape index: {}]   ;;  %s2031_s1 = inlined_call_operand.<no memory space> [shape: f32[1], index: 1, kind: input, shape index: {}]   ;;  %s2032_s2 = inlined_call_operand.hbm [shape: f32[5,32], index: 2, kind: input, shape index: {}]   ;;  %s2033_s3 = inlined_call_operand.vmem [shape: f32[8,32], index: 3, kind: input, shape index: {}]   ;;  %s2034_s4 = inlined_call_operand.hbm [shape: f32[32,512], index: 4, kind: input, shape index: {}]   ;;  %s2035_s5 = inlined_call_operand.hbm [shape: f32[8,5], index: 5, kind: output, shape index: {}]  }
   0x1   :  { %12 = vsyncpa [#allocation5], 0 }
   0x2   :  { %13 = vsyncpa [#allocation10], 0 }
   0x3   :  { %14 = vsyncpa [#allocation6], 0  ;;  %s21_s20 = sshll.u32 %s2030_s0, 4  ;;  %s22_s20 = int_to_ptr.vmem [resolvable:$true] %s21_s20 }
   0x4   :  { %s1716_s21 = scalar_lea.vmem %s22_s20, 16  ;;  %p1721_p1 = scmp.lt.s32.totalorder %s22_s20, %s22_s20 }
   0x5   :  { %p1717_p0 = scmp.ne.s32.totalorder %s22_s20, %s1716_s21  ;;  %p1722_p2 = scmp.lt.s32.totalorder %s1716_s21, %s1716_s21 }
   0x7   :  { %p1723_p3 = por %p1722_p2, %p1721_p1 }
   0x9   :  { %p1724_p4 = pnand %p1723_p3, %p1717_p0 }
   0xb   :  { %1727 = shalt.err (!%p1724_p4)
}
   0xc   :  { %s1802_s22 = smov [#allocation4]   ;;  %s1803_s23 = smov [#allocation8]  }
   0xd   :  { %24 = dma.vmem_to_smem %s22_s20, 16, %s1802_s22, [#allocation7]  }
   0xe   :  { %s33_s24 = sshll.u32 %s1803_s23, 4  ;;  %s1804_s25 = smov [#allocation9]   ;;  %s34_s24 = int_to_ptr.vmem [resolvable:$true] %s33_s24 }
   0xf   :  { %s44_s26 = sshll.u32 %s1804_s25, 4  ;;  %s1728_s29 = scalar_lea.hbm %s2032_s2, 128  ;;  %s45_s26 = int_to_ptr.vmem [resolvable:$true] %s44_s26 }
  0x10   :  { %p1729_p5 = scmp.ne.s32.totalorder %s2032_s2, %s1728_s29  ;;  %p1732_p6 = scmp.lt.u32.totalorder %s1728_s29, %s2032_s2 }
  0x12   :  { %p1734_p7 = pnand %p1732_p6, %p1729_p5 }
  0x14   :  { %1737 = shalt.err (!%p1734_p7)
}
  0x15   :  { %s1738_s8 = scalar_lea.vmem %s34_s24, 128  ;;  %p1743_p9 = scmp.lt.s32.totalorder %s34_s24, %s34_s24 }
  0x16   :  { %p1739_p8 = scmp.ne.s32.totalorder %s34_s24, %s1738_s8  ;;  %p1744_p10 = scmp.lt.s32.totalorder %s1738_s8, %s1738_s8 }
  0x18   :  { %p1745_p11 = por %p1744_p10, %p1743_p9 }
  0x1a   :  { %p1746_p12 = pnand %p1745_p11, %p1739_p8 }
  0x1c   :  { %1749 = shalt.err (!%p1746_p12)
}
  0x1d   :  { %36 = dma.hbm_to_vmem [thread:$0]  %s2032_s2, 128, %s34_s24, [#allocation5]  }
  0x1e   :  { %s1750_s13 = scalar_lea.hbm %s2034_s4, 2048 }
  0x1f   :  { %p1751_p13 = scmp.ne.s32.totalorder %s2034_s4, %s1750_s13  ;;  %p1754_p0 = scmp.lt.u32.totalorder %s1750_s13, %s2034_s4 }
  0x21   :  { %p1756_p1 = pnand %p1754_p0, %p1751_p13 }
  0x23   :  { %1759 = shalt.err (!%p1756_p1)
}
  0x24   :  { %s1760_s18 = scalar_lea.vmem %s45_s26, 2048  ;;  %p1765_p3 = scmp.lt.s32.totalorder %s45_s26, %s45_s26 }
  0x25   :  { %p1761_p2 = scmp.ne.s32.totalorder %s45_s26, %s1760_s18  ;;  %p1766_p4 = scmp.lt.s32.totalorder %s1760_s18, %s1760_s18 }
  0x27   :  { %p1767_p5 = por %p1766_p4, %p1765_p3 }
  0x29   :  { %p1768_p6 = pnand %p1767_p5, %p1761_p2 }
  0x2b   :  { %1771 = shalt.err (!%p1768_p6)
}
  0x2c   :  { %s1805_s2 = smov 512   ;;  %s1806_s19 = smov 32  }
  0x2d   :  { %50 = dma.hbm_to_vmem [thread:$0]  %s2034_s4, 2048, %s45_s26, [#allocation10], %s1805_s2, %s1805_s2, %s1806_s19  }
  0x2e   :  { %1794 = dma.done.wait [#allocation7], 16  }
  0x2f   :  { %1795 = vsyncadd [#allocation7], 4294967280 }
  0x30   :  { %1796 = dma.done.wait [#allocation5], 128  }
  0x31   :  { %1797 = vsyncadd [#allocation5], 4294967168 }
  0x32   :  { %1798 = dma.done.wait [#allocation10], 2048  }
  0x33   :  { %1799 = vsyncadd [#allocation10], 4294965248 }
  0x34   :  { %60 = sfence }
  0x35   :  { %v63_v0 = vld [vmem:[#allocation9 + $0x8] sm:$0xff]  ;;  %v62_v2 = vld [vmem:[#allocation9] sm:$0xff]  ;;  %v1807_v7 = vmov 0.0   ;;  %v65_v12 = vld [vmem:[#allocation9 + $0x18] sm:$0xff]  ;;  %vm78_vm0 = vcmask 261120   ;;  %vm1808_vm1 = vmmov 0  }
  0x36   :  { %v67_v1 = vld [vmem:[#allocation9 + $0x28] sm:$0xff]  ;;  %v66_v4 = vld [vmem:[#allocation9 + $0x20] sm:$0xff]  ;;  %146 = vmatprep.mubr.f32.mxu0 %v1807_v7  ;;  %217 = vmatprep.mubr.f32.mxu1 %v1807_v7  ;;  %v69_v13 = vld [vmem:[#allocation9 + $0x38] sm:$0xff]  ;;  %s1809_s4 = smov 96   ;;  %s1810_s24 = smov 64   ;;  %vm1505_vm2 = vcmask 39936  }
  0x37   :  { %v1686_v3 = vpack.c.bf16 %v67_v1, %v63_v0  ;;  %v71_v5 = vld [vmem:[#allocation9 + $0x48] sm:$0xff]  ;;  %v1688_v8 = vpack.c.bf16 %v66_v4, %v62_v2  ;;  %v70_v10 = vld [vmem:[#allocation9 + $0x40] sm:$0xff]  ;;  %v64_v14 = vld [vmem:[#allocation9 + $0x10] sm:$0xff]  ;;  %v1694_v16 = vpack.c.bf16 %v69_v13, %v65_v12  ;;  %s1530_s25 = sld [smem:[#allocation4 + $0x1]]  ;;  %s1533_s26 = sld [smem:[#allocation4 + $0x2]] }
  0x38   :  { %v75_v6 = vld [vmem:[#allocation9 + $0x68] sm:$0xff]  ;;  %v74_v11 = vld [vmem:[#allocation9 + $0x60] sm:$0xff]  ;;  %v68_v17 = vld [vmem:[#allocation9 + $0x30] sm:$0xff]  ;;  %s1536_s27 = sld [smem:[#allocation4 + $0x3]]  ;;  %s1979_s28 = sld [smem:[#allocation4 + $0x4]] }
  0x39   :  { %v1690_v9 = vpack.c.bf16 %v75_v6, %v71_v5  ;;  %1687 = vmatprep.subr.bf16.mxu0 %v1686_v3  ;;  %v1692_v15 = vpack.c.bf16 %v74_v11, %v70_v10  ;;  %v73_v18 = vld [vmem:[#allocation9 + $0x58] sm:$0xff]  ;;  %v1696_v20 = vpack.c.bf16 %v68_v17, %v64_v14  ;;  %v72_v22 = vld [vmem:[#allocation9 + $0x50] sm:$0xff]  ;;  %1695 = vmatprep.subr.bf16.mxu1 %v1694_v16  ;;  %s1981_s29 = sld [smem:[#allocation4 + $0x5]]  ;;  %s1983_s0 = sld [smem:[#allocation4 + $0x6]] }
  0x3a   :  { %1689 = vmatpush1.bf16.msra.mxu0 %v1688_v8  ;;  %v77_v19 = vld [vmem:[#allocation9 + $0x78] sm:$0xff]  ;;  %v76_v23 = vld [vmem:[#allocation9 + $0x70] sm:$0xff]  ;;  %s1985_s30 = sld [smem:[#allocation4 + $0x7]]  ;;  %s1989_s6 = sld [smem:[#allocation4 + $0x8]] }
  0x3b   :  { %1691 = vmatprep.subr.bf16.mxu0 %v1690_v9  ;;  %v1698_v21 = vpack.c.bf16 %v77_v19, %v73_v18  ;;  %1697 = vmatpush1.bf16.msra.mxu1 %v1696_v20  ;;  %v1700_v24 = vpack.c.bf16 %v76_v23, %v72_v22  ;;  %v61_v25 = vld [vmem:[#allocation8] sm:$0x1f]  ;;  %s1991_s7 = sld [smem:[#allocation4 + $0x9]]  ;;  %s1995_s8 = sld [smem:[#allocation4 + $0xa]] }
  0x3c   :  { %v1885_v31 = vld [vmem:[%s2033_s3] sm:$0xff]  ;;  %s307_s3 = sld [smem:[#allocation4]]  ;;  %s1997_s9 = sld [smem:[#allocation4 + $0xb]] }
  0x3d   :  { %1699 = vmatprep.subr.bf16.mxu1 %v1698_v21  ;;  %v387_v52 = vstv %s1530_s25  ;;  %v466_v58 = vstv %s1533_s26  ;;  %s2001_s10 = sld [smem:[#allocation4 + $0xc]]  ;;  %s2003_s11 = sld [smem:[#allocation4 + $0xd]] }
  0x3e   :  { %1693 = vmatpush1.bf16.msra.mxu0 %v1692_v15  ;;  %v545_v60 = vstv %s1536_s27  ;;  %v624_v5 = vstv %s1979_s28  ;;  %s2007_s12 = sld [smem:[#allocation4 + $0xe]]  ;;  %s2009_s13 = sld [smem:[#allocation4 + $0xf]] }
  0x3f   :  { %1606 = vmatprep.subr.mxu0 %v1807_v7  ;;  %1701 = vmatpush1.bf16.msra.mxu1 %v1700_v24  ;;  %v782_v17 = vstv %s1983_s0  ;;  %s1811_s16 = smov [#allocation11]  }
  0x40   :  { %1611 = vmatprep.subr.mxu1 %v1807_v7  ;;  %v861_v19 = vstv %s1985_s30  ;;  %s1513_s17 = sshll.u32 %s1811_s16, 4  ;;  %s1514_s17 = int_to_ptr.vmem [resolvable:$true] %s1513_s17 }
  0x41   :  { %1524 = vmatmul.mubr.msk.f32.vlgmr.msra.gmra.mrb[0].mxu0 %vm78_vm0, %v61_v25  ;;  %s1772_s18 = scalar_lea.vmem %s1514_s17, 128  ;;  %p1777_p8 = scmp.lt.s32.totalorder %s1514_s17, %s1514_s17 }
  0x42   :  { %1525 = vmatmul.mubr.msk.f32.vlgmr.msra.gmra.mrb[0].mxu1 %vm78_vm0, %v61_v25  ;;  %1608 = vmatprep.mubr.msk.f32.mxu0 %vm1808_vm1, %v1807_v7  ;;  %v308_v50 = vstv %s307_s3  ;;  %p1773_p7 = scmp.ne.s32.totalorder %s1514_s17, %s1772_s18  ;;  %p1778_p9 = scmp.lt.s32.totalorder %s1772_s18, %s1772_s18 }
  0x43   :  { %1613 = vmatprep.mubr.msk.f32.mxu1 %vm1808_vm1, %v1807_v7 }
  0x44   :  { %p1779_p10 = por %p1778_p9, %p1777_p8 }
  0x46   :  { %p1780_p11 = pnand %p1779_p10, %p1773_p7 }
 0x114   :  { %v148_v26 = vpop.f32.mrb[0].mxu0 }
 0x115   :  { %224 = vst [vmem:[#allocation2] sm:$0x1f] %v148_v26  ;;  %v150_v27 = vpop.f32.mrb[1].mxu0  ;;  %v219_v28 = vpop.f32.mrb[0].mxu1 }
 0x116   :  { %225 = vst [vmem:[#allocation2 + $0x8] sm:$0x1f] %v150_v27  ;;  %226 = vst [vmem:[#allocation2 + $0x10] sm:$0x1f] %v219_v28  ;;  %v221_v29 = vpop.f32.mrb[1].mxu1 }
 0x117   :  { %227 = vst [vmem:[#allocation2 + $0x18] sm:$0x1f] %v221_v29  ;;  %v940_v29 = vstv %s1989_s6 }
 0x11c   :  { %v229_v30 = vld [vmem:[#allocation2] sm:$0x1f] }
 0x11d   :  { %469 = vrot.lane.b32.xlu1 %v229_v30, %s1806_s19  ;;  %311 = vrot.lane.b32.xlu0 %v229_v30, %s1809_s4  ;;  %v548_v32 = vld [vmem:[#allocation2 + $0x8] sm:$0x1f]  ;;  %v864_v33 = vld [vmem:[#allocation2 + $0x10] sm:$0x1f] }
 0x11e   :  { %1607 = vmatpush3.xpose.msk.msra.mxu0 %vm78_vm0, %v229_v30  ;;  %v1180_v34 = vld [vmem:[#allocation2 + $0x18] sm:$0x1f] }
 0x11f   :  { %1616 = vmatprep.subr.mxu0 %v1807_v7 }
 0x121   :  { %390 = vrot.lane.b32.xlu0 %v229_v30, %s1810_s24  ;;  %627 = vrot.lane.b32.xlu1 %v548_v32, %s1809_s4 }
 0x122   :  { %1609 = vmatmul.mubr.msk.f32.vlgmr.msra.gmra.mrb[2].mxu0 %vm78_vm0, %v1885_v31 }
 0x123   :  { %1618 = vmatprep.mubr.msk.f32.mxu0 %vm1808_vm1, %v1807_v7 }
 0x125   :  { %706 = vrot.lane.b32.xlu0 %v548_v32, %s1810_s24  ;;  %785 = vrot.lane.b32.xlu1 %v548_v32, %s1806_s19 }
 0x129   :  { %943 = vrot.lane.b32.xlu0 %v864_v33, %s1809_s4  ;;  %1022 = vrot.lane.b32.xlu1 %v864_v33, %s1810_s24 }
 0x12d   :  { %1101 = vrot.lane.b32.xlu0 %v864_v33, %s1806_s19  ;;  %1259 = vrot.lane.b32.xlu1 %v1180_v34, %s1809_s4 }
 0x131   :  { %1338 = vrot.lane.b32.xlu0 %v1180_v34, %s1810_s24  ;;  %1417 = vrot.lane.b32.xlu1 %v1180_v34, %s1806_s19 }
 0x18f   :  { %v470_v35 = vpop.permute.xlu1 %469  ;;  %v312_v36 = vpop.permute.xlu0 %311 }
 0x190   :  { %1612 = vmatpush3.xpose.msk.msra.mxu1 %vm78_vm0, %v312_v36 }
 0x191   :  { %1621 = vmatprep.subr.mxu1 %v1807_v7 }
 0x193   :  { %v391_v37 = vpop.permute.xlu0 %390  ;;  %v628_v38 = vpop.permute.xlu1 %627  ;;  %1614 = vmatmul.mubr.msk.f32.vlgmr.msra.gmra.mrb[2].mxu1 %vm78_vm0, %v1885_v31 }
 0x194   :  { %1617 = vmatpush3.xpose.msk.msra.mxu0 %vm78_vm0, %v391_v37  ;;  %1622 = vmatpush3.xpose.msk.msra.mxu1 %vm78_vm0, %v470_v35 }
 0x195   :  { %1623 = vmatprep.mubr.msk.f32.mxu1 %vm1808_vm1, %v1807_v7  ;;  %1626 = vmatprep.subr.mxu0 %v1807_v7 }
 0x196   :  { %1631 = vmatprep.subr.mxu1 %v1807_v7 }
 0x197   :  { %1619 = vmatmul.mubr.msk.f32.vlgmr.msra.gmra.mrb[4].mxu0 %vm78_vm0, %v1885_v31  ;;  %v707_v39 = vpop.permute.xlu0 %706  ;;  %1624 = vmatmul.mubr.msk.f32.vlgmr.msra.gmra.mrb[4].mxu1 %vm78_vm0, %v1885_v31  ;;  %v786_v40 = vpop.permute.xlu1 %785 }
 0x198   :  { %1627 = vmatpush3.xpose.msk.msra.mxu0 %vm78_vm0, %v548_v32  ;;  %1632 = vmatpush3.xpose.msk.msra.mxu1 %vm78_vm0, %v628_v38 }
 0x199   :  { %1628 = vmatprep.mubr.msk.f32.mxu0 %vm1808_vm1, %v1807_v7  ;;  %1633 = vmatprep.mubr.msk.f32.mxu1 %vm1808_vm1, %v1807_v7 }
 0x19a   :  { %1641 = vmatprep.subr.mxu1 %v1807_v7  ;;  %1636 = vmatprep.subr.mxu0 %v1807_v7 }
 0x19b   :  { %1629 = vmatmul.mubr.msk.f32.vlgmr.msra.gmra.mrb[6].mxu0 %vm78_vm0, %v1885_v31  ;;  %1634 = vmatmul.mubr.msk.f32.vlgmr.msra.gmra.mrb[6].mxu1 %vm78_vm0, %v1885_v31  ;;  %v944_v41 = vpop.permute.xlu0 %943  ;;  %v1023_v42 = vpop.permute.xlu1 %1022 }
 0x19c   :  { %1637 = vmatpush3.xpose.msk.msra.mxu0 %vm78_vm0, %v707_v39  ;;  %1642 = vmatpush3.xpose.msk.msra.mxu1 %vm78_vm0, %v786_v40 }
 0x19d   :  { %1638 = vmatprep.mubr.msk.f32.mxu0 %vm1808_vm1, %v1807_v7  ;;  %1643 = vmatprep.mubr.msk.f32.mxu1 %vm1808_vm1, %v1807_v7 }
 0x19e   :  { %1651 = vmatprep.subr.mxu1 %v1807_v7  ;;  %1646 = vmatprep.subr.mxu0 %v1807_v7 }
 0x19f   :  { %1639 = vmatmul.mubr.msk.f32.vlgmr.msra.gmra.mrb[8].mxu0 %vm78_vm0, %v1885_v31  ;;  %1644 = vmatmul.mubr.msk.f32.vlgmr.msra.gmra.mrb[8].mxu1 %vm78_vm0, %v1885_v31  ;;  %v1102_v43 = vpop.permute.xlu0 %1101  ;;  %v1260_v44 = vpop.permute.xlu1 %1259 }
 0x1a0   :  { %1647 = vmatpush3.xpose.msk.msra.mxu0 %vm78_vm0, %v864_v33  ;;  %1652 = vmatpush3.xpose.msk.msra.mxu1 %vm78_vm0, %v944_v41  ;;  %v1098_v41 = vstv %s1995_s8 }
 0x1a1   :  { %1648 = vmatprep.mubr.msk.f32.mxu0 %vm1808_vm1, %v1807_v7  ;;  %1653 = vmatprep.mubr.msk.f32.mxu1 %vm1808_vm1, %v1807_v7 }
 0x1a2   :  { %1661 = vmatprep.subr.mxu1 %v1807_v7  ;;  %1656 = vmatprep.subr.mxu0 %v1807_v7 }
 0x1a3   :  { %1649 = vmatmul.mubr.msk.f32.vlgmr.msra.gmra.mrb[10].mxu0 %vm78_vm0, %v1885_v31  ;;  %1654 = vmatmul.mubr.msk.f32.vlgmr.msra.gmra.mrb[10].mxu1 %vm78_vm0, %v1885_v31  ;;  %v1339_v45 = vpop.permute.xlu0 %1338  ;;  %v1418_v46 = vpop.permute.xlu1 %1417 }
 0x1a4   :  { %1657 = vmatpush3.xpose.msk.msra.mxu0 %vm78_vm0, %v1023_v42  ;;  %1662 = vmatpush3.xpose.msk.msra.mxu1 %vm78_vm0, %v1102_v43  ;;  %v1177_v43 = vstv %s1997_s9 }
 0x1a5   :  { %1658 = vmatprep.mubr.msk.f32.mxu0 %vm1808_vm1, %v1807_v7  ;;  %1663 = vmatprep.mubr.msk.f32.mxu1 %vm1808_vm1, %v1807_v7 }
 0x1a6   :  { %1666 = vmatprep.subr.mxu0 %v1807_v7  ;;  %1671 = vmatprep.subr.mxu1 %v1807_v7 }
 0x1a7   :  { %1659 = vmatmul.mubr.msk.f32.vlgmr.msra.gmra.mrb[12].mxu0 %vm78_vm0, %v1885_v31  ;;  %1664 = vmatmul.mubr.msk.f32.vlgmr.msra.gmra.mrb[12].mxu1 %vm78_vm0, %v1885_v31 }
 0x1a8   :  { %1667 = vmatpush3.xpose.msk.msra.mxu0 %vm78_vm0, %v1180_v34  ;;  %1672 = vmatpush3.xpose.msk.msra.mxu1 %vm78_vm0, %v1260_v44 }
 0x1a9   :  { %1668 = vmatprep.mubr.msk.f32.mxu0 %vm1808_vm1, %v1807_v7  ;;  %1673 = vmatprep.mubr.msk.f32.mxu1 %vm1808_vm1, %v1807_v7 }
 0x1aa   :  { %1676 = vmatprep.subr.mxu0 %v1807_v7  ;;  %1681 = vmatprep.subr.mxu1 %v1807_v7 }
 0x1ab   :  { %1669 = vmatmul.mubr.msk.f32.vlgmr.msra.gmra.mrb[14].mxu0 %vm78_vm0, %v1885_v31  ;;  %1674 = vmatmul.mubr.msk.f32.vlgmr.msra.gmra.mrb[14].mxu1 %vm78_vm0, %v1885_v31 }
 0x1ac   :  { %1677 = vmatpush3.xpose.msk.msra.mxu0 %vm78_vm0, %v1339_v45  ;;  %1682 = vmatpush3.xpose.msk.msra.mxu1 %vm78_vm0, %v1418_v46 }
 0x1ad   :  { %1678 = vmatprep.mubr.msk.f32.mxu0 %vm1808_vm1, %v1807_v7  ;;  %1683 = vmatprep.mubr.msk.f32.mxu1 %vm1808_vm1, %v1807_v7  ;;  %v703_v7 = vstv %s1981_s29 }
 0x1af   :  { %1679 = vmatmul.mubr.msk.f32.vlgmr.msra.gmra.mrb[16].mxu0 %vm78_vm0, %v1885_v31  ;;  %1684 = vmatmul.mubr.msk.f32.vlgmr.msra.gmra.mrb[16].mxu1 %vm78_vm0, %v1885_v31  ;;  %v1019_v31 = vstv %s1991_s7 }
 0x1f5   :  { %v302_v47 = vpop.f32.mrb[2].mxu0 }
 0x1f6   :  { %v1610_v48 = vpop.f32.mrb[3].mxu0  ;;  %v306_v49 = vmax.f32 %v302_v47, 0.0 }
 0x1f8   :  { %v309_v53 = vmul.f32 %v308_v50, %v306_v49 }
 0x266   :  { %v381_v51 = vpop.f32.mrb[2].mxu1 }
 0x267   :  { %v385_v54 = vmax.f32 %v381_v51, 0.0  ;;  %v1615_v55 = vpop.f32.mrb[3].mxu1 }
 0x268   :  { %v1335_v55 = vstv %s2003_s11 }
 0x269   :  { %v388_v56 = vmul.f32 %v387_v52, %v385_v54 }
 0x26a   :  { %v460_v57 = vpop.f32.mrb[4].mxu0  ;;  %v539_v59 = vpop.f32.mrb[4].mxu1 }
 0x26b   :  { %v389_v61 = vadd.f32 %v388_v56, %v309_v53  ;;  %v464_v62 = vmax.f32 %v460_v57, 0.0  ;;  %v1620_v63 = vpop.f32.mrb[5].mxu0  ;;  %v543_v0 = vmax.f32 %v539_v59, 0.0  ;;  %v1625_v1 = vpop.f32.mrb[5].mxu1  ;;  %v1256_v53 = vstv %s2001_s10 }
 0x26c   :  { %v1414_v1 = vstv %s2007_s12 }
 0x26d   :  { %v467_v2 = vmul.f32 %v466_v58, %v464_v62  ;;  %v546_v3 = vmul.f32 %v545_v60, %v543_v0 }
 0x26e   :  { %v618_v4 = vpop.f32.mrb[6].mxu0  ;;  %v697_v6 = vpop.f32.mrb[6].mxu1 }
 0x26f   :  { %v468_v8 = vadd.f32 %v467_v2, %v389_v61  ;;  %v622_v9 = vmax.f32 %v618_v4, 0.0  ;;  %v1630_v10 = vpop.f32.mrb[7].mxu0  ;;  %v701_v11 = vmax.f32 %v697_v6, 0.0  ;;  %v1635_v12 = vpop.f32.mrb[7].mxu1 }
 0x271   :  { %v547_v13 = vadd.f32 %v546_v3, %v468_v8  ;;  %v625_v14 = vmul.f32 %v624_v5, %v622_v9  ;;  %v704_v15 = vmul.f32 %v703_v7, %v701_v11  ;;  %v1493_v3 = vstv %s2009_s13 }
 0x272   :  { %v776_v16 = vpop.f32.mrb[8].mxu0  ;;  %v855_v18 = vpop.f32.mrb[8].mxu1 }
 0x273   :  { %v626_v20 = vadd.f32 %v625_v14, %v547_v13  ;;  %v780_v21 = vmax.f32 %v776_v16, 0.0  ;;  %v1640_v22 = vpop.f32.mrb[9].mxu0  ;;  %v859_v23 = vmax.f32 %v855_v18, 0.0  ;;  %v1645_v24 = vpop.f32.mrb[9].mxu1  ;;  %v1497_v13 = vstv %s2031_s1 }
 0x275   :  { %v705_v25 = vadd.f32 %v704_v15, %v626_v20  ;;  %v783_v26 = vmul.f32 %v782_v17, %v780_v21  ;;  %v862_v27 = vmul.f32 %v861_v19, %v859_v23 }
 0x276   :  { %v934_v28 = vpop.f32.mrb[10].mxu0  ;;  %v1013_v30 = vpop.f32.mrb[10].mxu1 }
 0x277   :  { %v784_v32 = vadd.f32 %v783_v26, %v705_v25  ;;  %v938_v33 = vmax.f32 %v934_v28, 0.0  ;;  %v1650_v34 = vpop.f32.mrb[11].mxu0  ;;  %v1017_v35 = vmax.f32 %v1013_v30, 0.0  ;;  %v1655_v36 = vpop.f32.mrb[11].mxu1 }
 0x279   :  { %v863_v37 = vadd.f32 %v862_v27, %v784_v32  ;;  %v941_v38 = vmul.f32 %v940_v29, %v938_v33  ;;  %v1020_v39 = vmul.f32 %v1019_v31, %v1017_v35 }
 0x27a   :  { %v1092_v40 = vpop.f32.mrb[12].mxu0  ;;  %v1171_v42 = vpop.f32.mrb[12].mxu1 }
 0x27b   :  { %v942_v44 = vadd.f32 %v941_v38, %v863_v37  ;;  %v1096_v45 = vmax.f32 %v1092_v40, 0.0  ;;  %v1660_v46 = vpop.f32.mrb[13].mxu0  ;;  %v1175_v47 = vmax.f32 %v1171_v42, 0.0  ;;  %v1665_v48 = vpop.f32.mrb[13].mxu1 }
 0x27d   :  { %v1021_v49 = vadd.f32 %v1020_v39, %v942_v44  ;;  %v1099_v50 = vmul.f32 %v1098_v41, %v1096_v45  ;;  %v1178_v51 = vmul.f32 %v1177_v43, %v1175_v47 }
 0x27e   :  { %v1250_v52 = vpop.f32.mrb[14].mxu0  ;;  %v1329_v54 = vpop.f32.mrb[14].mxu1 }
 0x27f   :  { %v1100_v56 = vadd.f32 %v1099_v50, %v1021_v49  ;;  %v1254_v57 = vmax.f32 %v1250_v52, 0.0  ;;  %v1670_v58 = vpop.f32.mrb[15].mxu0  ;;  %v1333_v59 = vmax.f32 %v1329_v54, 0.0  ;;  %v1675_v60 = vpop.f32.mrb[15].mxu1 }
 0x281   :  { %v1179_v61 = vadd.f32 %v1178_v51, %v1100_v56  ;;  %v1257_v62 = vmul.f32 %v1256_v53, %v1254_v57  ;;  %v1336_v63 = vmul.f32 %v1335_v55, %v1333_v59 }
 0x282   :  { %v1408_v0 = vpop.f32.mrb[16].mxu0  ;;  %v1487_v2 = vpop.f32.mrb[16].mxu1 }
 0x283   :  { %v1258_v4 = vadd.f32 %v1257_v62, %v1179_v61  ;;  %v1412_v5 = vmax.f32 %v1408_v0, 0.0  ;;  %v1680_v6 = vpop.f32.mrb[17].mxu0  ;;  %v1491_v7 = vmax.f32 %v1487_v2, 0.0  ;;  %v1685_v8 = vpop.f32.mrb[17].mxu1 }
 0x285   :  { %v1337_v9 = vadd.f32 %v1336_v63, %v1258_v4  ;;  %v1415_v10 = vmul.f32 %v1414_v1, %v1412_v5  ;;  %v1494_v11 = vmul.f32 %v1493_v3, %v1491_v7 }
 0x287   :  { %v1416_v12 = vadd.f32 %v1415_v10, %v1337_v9 }
 0x289   :  { %v1495_v14 = vadd.f32 %v1494_v11, %v1416_v12 }
 0x28b   :  { %v1498_v15 = vadd.f32 %v1497_v13, %v1495_v14 }
 0x28d   :  { %v1573_v16 = vmul.f32 -1.442695, %v1498_v15 }
 0x28f   :  { %1712 = vpow2.f32 %v1573_v16 }
 0x299   :  { %v1713_v17 = vpop.eup %1712 }
 0x29a   :  { %v1502_v18 = vadd.f32 1.0, %v1713_v17 }
 0x29c   :  { %1714 = vrcp.f32 %v1502_v18 }
 0x2a6   :  { %v1715_v19 = vpop.eup %1714 }
 0x2a7   :  { %1506 = vst.msk [vmem:[#allocation11] sm:$0xff] %vm1505_vm2, %v1715_v19 }
 0x2a8   :  { %1783 = shalt.err (!%p1780_p11)
}
 0x2a9   :  { %s1784_s19 = scalar_lea.hbm %s2035_s5, 128 }
 0x2aa   :  { %p1785_p12 = scmp.ne.s32.totalorder %s2035_s5, %s1784_s19  ;;  %p1788_p13 = scmp.lt.u32.totalorder %s1784_s19, %s2035_s5 }
 0x2ac   :  { %p1790_p0 = pnand %p1788_p13, %p1785_p12 }
 0x2ae   :  { %1793 = shalt.err (!%p1790_p0)
}
 0x2af   :  { %1516 = dma.vmem_to_hbm [thread:$0]  %s1514_s17, 128, %s2035_s5, [#allocation6]  }
 0x2b0   :  { %1800 = dma.done.wait [#allocation6], 128  }
 0x2b1   :  { %1801 = vsyncadd [#allocation6], 4294967168 }
 0x2b2   :  { %1520 = vsyncpa [#allocation5], 1 }
 0x2b3   :  { %1521 = vsyncpa [#allocation10], 1 }
 0x2b4   :  { %1522 = vsyncpa [#allocation6], 1 }
 0x2b5   :  { %1523 = vsyncpa [#allocation7], 1 }

</bundles_post_ra>
